<compile_context>
chip_gen: v7x
topology: tpu7x:2x2x1
jax: 0.10.0
libtpu: 0.0.40
codegen_flags: <defaults>
</compile_context>

<pallas_src>
import jax
import jax.numpy as jnp
from jax import lax
from jax.experimental import pallas as pl
from jax.experimental.pallas import tpu as pltpu


# ----------------------------------------------------------------------------
# Parameter transform (plain JAX, fused by XLA; one vreg of work per weight update)
#   eff[i, u]                = (1 - 0.1*sigmoid(scalar))[i, u] * softmax(weight, 1)[i, u]
#   bd[f*nx+i, f*nu+u]       = eff[i, u]      (block-diagonal, NT orientation)
# ----------------------------------------------------------------------------
def _effective_block_diag(weight, scalar, fold):
    s_clamped = 1.0 - 0.1 * jax.nn.sigmoid(scalar.astype(jnp.float32))   # (nx, nx)
    eff = s_clamped * jax.nn.softmax(weight.astype(jnp.float32), axis=1)  # (nx, nu)
    if fold == 1:
        return eff
    return jnp.kron(jnp.eye(fold, dtype=jnp.float32), eff)               # (fold*nx, fold*nu)


# ----------------------------------------------------------------------------
# Pallas kernel: lane-dense NT matmul
#   out[r, q] = sum_c x_fold[r, c] * bd[q, c]
# (contract last dim of both operands -> no transpose / vreg relayout before MXU)
# ----------------------------------------------------------------------------
def _folded_matmul_kernel(x_ref, bd_ref, o_ref):
    o_ref[...] = lax.dot_general(
        x_ref[...], bd_ref[...],
        dimension_numbers=(((1,), (1,)), ((), ())),   # NT contraction
        preferred_element_type=jnp.float32,
    ).astype(o_ref.dtype)


def _round_up(n, m):
    return ((n + m - 1) // m) * m


def constrained_linear(x, weight, scalar, *, tile_fold_rows=2048):
    batch, nu = x.shape
    nx, nu_w = weight.shape
    assert nu_w == nu, "weight must be (nx, nu)"
    assert scalar.shape == (nx, nx), "scalar must be (nx, nx)"
    assert nx == nu, "broadcast (nx,nx)*(nx,nu) requires nx == nu (as in the module)"
    assert tile_fold_rows % 8 == 0

    # Fold factor: make the contraction / output lane axis 128-wide when possible.
    fold = (128 // nu) if (nu <= 128 and 128 % nu == 0) else 1
    fold = max(fold, 1)

    # Block-diagonal effective weight (computed once per weight update; f32 exact,
    # bf16 only if the activations are already bf16 -> native MXU path).
    bd = _effective_block_diag(weight, scalar, fold)      # (fold*nx, fold*nu) f32
    if x.dtype == jnp.bfloat16:
        bd = bd.astype(jnp.bfloat16)

    # Fold the batch into the lane axis: (B, nu) -> (bf_pad, fold*nu).
    bf = pl.cdiv(batch, fold)                              # folded rows needed
    if bf <= 16:
        tile_bf = _round_up(bf, 8)                         # tiny problem: 1-2 tiles
    else:
        # Cap tile so the parallel grid has >= 2 steps (keeps both v7x TCs busy)
        # while staying large enough to amortize the ~0.35us per-step overhead.
        tile_bf = min(_round_up(pl.cdiv(bf, 2), 8), tile_fold_rows)
    bf_pad = _round_up(bf, tile_bf)
    b_pad = bf_pad * fold
    if b_pad != batch:
        x = jnp.pad(x, ((0, b_pad - batch), (0, 0)))       # zero rows -> zero outputs
    x_fold = x.reshape(bf_pad, fold * nu)                  # row-major, contiguous

    grid = (bf_pad // tile_bf,)

    itemsize = jnp.dtype(x.dtype).itemsize
    cost = pl.CostEstimate(
        flops=2 * bf_pad * (fold * nx) * (fold * nu),
        transcendentals=0,
        bytes_accessed=(bf_pad * fold * nu * itemsize          # x
                        + (fold * nx) * (fold * nu) * bd.dtype.itemsize  # bd (once)
                        + bf_pad * fold * nx * itemsize),       # out
    )

    out_fold = pl.pallas_call(
        _folded_matmul_kernel,
        out_shape=jax.ShapeDtypeStruct((bf_pad, fold * nx), x.dtype),
        grid=grid,
        in_specs=[
            # x tile: per-step block along the folded-batch axis (double-buffered DMA)
            pl.BlockSpec((tile_bf, fold * nu), lambda i: (i, 0)),
            # bd: constant block index -> fetched once, stays VMEM-resident
            pl.BlockSpec((fold * nx, fold * nu), lambda i: (0, 0)),
        ],
        out_specs=pl.BlockSpec((tile_bf, fold * nx), lambda i: (i, 0)),
        compiler_params=pltpu.CompilerParams(
            dimension_semantics=("parallel",)),   # shards batch tiles across TCs (v7x)
        cost_estimate=cost,
    )(x_fold, bd)

    # Unfold: (bf_pad, fold*nx) -> (b_pad, nx) -> (B, nx)
    return out_fold.reshape(b_pad, nx)[:batch]


# ----------------------------------------------------------------------------
# Pure-JAX reference
# ----------------------------------------------------------------------------
def constrained_linear_ref(x, weight, scalar):
    s_clamped = 1.0 - 0.1 * jax.nn.sigmoid(scalar)
    w_softmax = s_clamped * jax.nn.softmax(weight, axis=1)
    return x @ w_softmax.T


if __name__ == "__main__":
    nx = nu = 32

    key = jax.random.PRNGKey(0)
    k_w, k_s, k_x = jax.random.split(key, 3)
    # torch.rand -> uniform [0, 1)
    weight = jax.random.uniform(k_w, (nx, nu), dtype=jnp.float32)
    scalar = jax.random.uniform(k_s, (nx, nx), dtype=jnp.float32)

    # Small aligned batch
    x = jax.random.normal(k_x, (8, nu), dtype=jnp.float32)
    out = jax.block_until_ready(constrained_linear(x, weight, scalar))
    ref = constrained_linear_ref(x, weight, scalar)
    assert out.shape == (8, nx)
    assert jnp.allclose(out, ref, atol=1e-5, rtol=1e-5), "mismatch vs JAX reference (B=8)"

    # Ragged batch (exercises the fold + zero-pad path)
    x2 = jax.random.normal(jax.random.PRNGKey(1), (10, nu), dtype=jnp.float32)
    out2 = jax.block_until_ready(constrained_linear(x2, weight, scalar))
    ref2 = constrained_linear_ref(x2, weight, scalar)
    assert out2.shape == (10, nx)
    assert jnp.allclose(out2, ref2, atol=1e-5, rtol=1e-5), "mismatch vs JAX reference (B=10)"

    print("KERNEL_OK")
</pallas_src>

<mosaic_0001>
module attributes {stable_mosaic.version = 11 : i64} {
  func.func @_folded_matmul_kernel(%arg0: i32, %arg1: memref<8x128xf32, #tpu.memory_space<vmem>>, %arg2: memref<128x128xf32, #tpu.memory_space<vmem>>, %arg3: memref<8x128xf32, #tpu.memory_space<vmem>>) attributes {dimension_semantics = [#tpu.dimension_semantics<parallel>], iteration_bounds = array<i64: 1>, scalar_prefetch = 0 : i64, scratch_operands = 0 : i64, tpu.core_type = #tpu.core_type<tc>, window_params = [{transform_indices = @transform_0, window_bounds = array<i64: 8, 128>}, {pipeline_mode = #tpu.pipeline_mode<synchronous>, transform_indices = @transform_1, window_bounds = array<i64: 128, 128>}, {transform_indices = @transform_2, window_bounds = array<i64: 8, 128>}]} {
    %c0 = arith.constant 0 : index
    %c0_0 = arith.constant 0 : index
    %0 = vector.load %arg1[%c0, %c0_0] : memref<8x128xf32, #tpu.memory_space<vmem>>, vector<8x128xf32>
    %c0_1 = arith.constant 0 : index
    %c0_2 = arith.constant 0 : index
    %1 = vector.load %arg2[%c0_1, %c0_2] : memref<128x128xf32, #tpu.memory_space<vmem>>, vector<128x128xf32>
    %cst = arith.constant dense<0.000000e+00> : vector<8x128xf32>
    %2 = tpu.matmul %0, %1, %cst {dimension_numbers = #tpu.dot_dimension_numbers<[1], [1], [0], [0], [0, 0, 1, 0], [], []>} : vector<8x128xf32>, vector<128x128xf32>, vector<8x128xf32> -> vector<8x128xf32>
    %c0_3 = arith.constant 0 : index
    %c0_4 = arith.constant 0 : index
    %3 = vector.load %arg3[%c0_3, %c0_4] : memref<8x128xf32, #tpu.memory_space<vmem>>, vector<8x128xf32>
    tpu.vector_store %arg3[%c0_3, %c0_4], %2 {strides = array<i32>} : memref<8x128xf32, #tpu.memory_space<vmem>>, vector<8x128xf32>,
    return
  }
  func.func @transform_0(%arg0: i32) -> (i32, i32) {
    %c0_i32 = arith.constant 0 : i32
    %c0_i32_0 = arith.constant 0 : i32
    return %arg0, %c0_i32 : i32, i32
  }
  func.func @transform_1(%arg0: i32) -> (i32, i32) {
    %c0_i32 = arith.constant 0 : i32
    %c0_i32_0 = arith.constant 0 : i32
    %c0_i32_1 = arith.constant 0 : i32
    return %c0_i32, %c0_i32_0 : i32, i32
  }
  func.func @transform_2(%arg0: i32) -> (i32, i32) {
    %c0_i32 = arith.constant 0 : i32
    %c0_i32_0 = arith.constant 0 : i32
    return %arg0, %c0_i32 : i32, i32
  }
}

</mosaic_0001>

<bundles_post_ra>
// kernel: tpu_custom_call.1
= control target key start
LH: loop header
LB: loop body
LE: loop exit
PB: predicated region body
PF: predicated region fallthrough
CT: control target
= control target key end

     0   :  { %7 = vsyncpa [#allocation3], 0  ;;  %s364_s0 = inlined_call_operand.hbm [shape: f32[8,128], index: 0, kind: input, shape index: {}]   ;;  %s365_s1 = inlined_call_operand.hbm [shape: f32[128,128], index: 1, kind: input, shape index: {}]   ;;  %s366_s2 = inlined_call_operand.hbm [shape: f32[8,128], index: 2, kind: output, shape index: {}]  }
   0x1   :  { %8 = vsyncpa [#allocation6], 0 }
   0x2   :  { %9 = vsyncpa [#allocation4], 0  ;;  %s298_s9 = smov [#allocation2]   ;;  %s299_s11 = smov [#allocation5]  }
   0x3   :  { %s16_s10 = sshll.u32 %s298_s9, 4  ;;  %s25_s12 = sshll.u32 %s299_s11, 4  ;;  %s17_s10 = int_to_ptr.vmem [resolvable:$true] %s16_s10  ;;  %s321_s12 = int_to_ptr.vmem [resolvable:$true] %s25_s12 }
   0x4   :  { %s226_s15 = scalar_lea.hbm %s364_s0, 128 }
   0x5   :  { %p227_p0 = scmp.ne.s32.totalorder %s364_s0, %s226_s15  ;;  %p230_p1 = scmp.lt.u32.totalorder %s226_s15, %s364_s0 }
   0x7   :  { %p232_p2 = pnand %p230_p1, %p227_p0 }
   0x9   :  { %235 = shalt.err (!%p232_p2)
}
   0xa   :  { %s236_s20 = scalar_lea.vmem %s17_s10, 128  ;;  %p241_p4 = scmp.lt.s32.totalorder %s17_s10, %s17_s10 }
   0xb   :  { %p237_p3 = scmp.ne.s32.totalorder %s17_s10, %s236_s20  ;;  %p242_p5 = scmp.lt.s32.totalorder %s236_s20, %s236_s20 }
   0xd   :  { %p243_p6 = por %p242_p5, %p241_p4 }
   0xf   :  { %p244_p7 = pnand %p243_p6, %p237_p3 }
  0x11   :  { %247 = shalt.err (!%p244_p7)
}
  0x12   :  { %19 = dma.hbm_to_vmem [thread:$0]  %s364_s0, 128, %s17_s10, [#allocation3]  }
  0x13   :  { %s248_s25 = scalar_lea.hbm %s365_s1, 2048 }
  0x14   :  { %p249_p8 = scmp.ne.s32.totalorder %s365_s1, %s248_s25  ;;  %p252_p9 = scmp.lt.u32.totalorder %s248_s25, %s365_s1 }
  0x16   :  { %p254_p10 = pnand %p252_p9, %p249_p8 }
  0x18   :  { %257 = shalt.err (!%p254_p10)
}
  0x19   :  { %s258_s30 = scalar_lea.vmem %s321_s12, 2048  ;;  %p263_p12 = scmp.lt.s32.totalorder %s321_s12, %s321_s12 }
  0x1a   :  { %p259_p11 = scmp.ne.s32.totalorder %s321_s12, %s258_s30  ;;  %p264_p13 = scmp.lt.s32.totalorder %s258_s30, %s258_s30 }
  0x1c   :  { %p265_p0 = por %p264_p13, %p263_p12 }
  0x1e   :  { %p266_p1 = pnand %p265_p0, %p259_p11 }
  0x20   :  { %269 = shalt.err (!%p266_p1)
}
  0x21   :  { %s300_s0 = smov 128   ;;  %s301_s3 = smov 8  }
  0x22   :  { %31 = dma.hbm_to_vmem [thread:$0]  %s365_s1, 2048, %s321_s12, [#allocation6], %s300_s0, %s300_s0, %s301_s3  }
  0x23   :  { %292 = dma.done.wait [#allocation3], 128  }
  0x24   :  { %293 = vsyncadd [#allocation3], 4294967168 }
  0x25   :  { %294 = dma.done.wait [#allocation6], 2048  }
  0x26   :  { %295 = vsyncadd [#allocation6], 4294965248  ;;  %v302_v0 = vmov 0.0|0.0   ;;  %vm303_vm0 = vmmov 0   ;;  %v304_v1 = vmov 0.0   ;;  %v39_v2 = vld [vmem:[#allocation5] sm:$0xff] }
  0x27   :  { %194 = vmatprep.subr.bf16.mxu0 %v302_v0  ;;  %191 = vmatprep.mubr.msk.f32.mxu0 %vm303_vm0, %v304_v1  ;;  %v40_v3 = vld [vmem:[#allocation5 + $0x8] sm:$0xff]  ;;  %v41_v5 = vld [vmem:[#allocation5 + $0x10] sm:$0xff]  ;;  %v42_v6 = vld [vmem:[#allocation5 + $0x18] sm:$0xff]  ;;  %s305_s1 = smov [#allocation7]  }
  0x28   :  { %v195_v4 = vpack.c.bf16 %v40_v3, %v39_v2  ;;  %v198_v7 = vpack.c.bf16 %v42_v6, %v41_v5  ;;  %v43_v8 = vld [vmem:[#allocation5 + $0x20] sm:$0xff]  ;;  %v44_v9 = vld [vmem:[#allocation5 + $0x28] sm:$0xff]  ;;  %v45_v11 = vld [vmem:[#allocation5 + $0x30] sm:$0xff]  ;;  %s132_s6 = sshll.u32 %s305_s1, 4  ;;  %s133_s6 = int_to_ptr.vmem [resolvable:$true] %s132_s6 }
  0x29   :  { %v201_v10 = vpack.c.bf16 %v44_v9, %v43_v8  ;;  %v46_v12 = vld [vmem:[#allocation5 + $0x38] sm:$0xff]  ;;  %v47_v14 = vld [vmem:[#allocation5 + $0x40] sm:$0xff]  ;;  %v48_v15 = vld [vmem:[#allocation5 + $0x48] sm:$0xff]  ;;  %s270_s7 = scalar_lea.vmem %s133_s6, 128  ;;  %p275_p3 = scmp.lt.s32.totalorder %s133_s6, %s133_s6 }
  0x2a   :  { %196 = vmatpush3.bf16.xpose.msra.mxu0 %v195_v4  ;;  %v204_v13 = vpack.c.bf16 %v46_v12, %v45_v11  ;;  %v207_v16 = vpack.c.bf16 %v48_v15, %v47_v14  ;;  %v49_v17 = vld [vmem:[#allocation5 + $0x50] sm:$0xff]  ;;  %v50_v18 = vld [vmem:[#allocation5 + $0x58] sm:$0xff]  ;;  %v51_v20 = vld [vmem:[#allocation5 + $0x60] sm:$0xff]  ;;  %p271_p2 = scmp.ne.s32.totalorder %s133_s6, %s270_s7  ;;  %p276_p4 = scmp.lt.s32.totalorder %s270_s7, %s270_s7 }
  0x2b   :  { %197 = vmatprep.subr.bf16.mxu0 %v302_v0  ;;  %v210_v19 = vpack.c.bf16 %v50_v18, %v49_v17  ;;  %v52_v21 = vld [vmem:[#allocation5 + $0x68] sm:$0xff]  ;;  %v53_v23 = vld [vmem:[#allocation5 + $0x70] sm:$0xff]  ;;  %v54_v24 = vld [vmem:[#allocation5 + $0x78] sm:$0xff] }
  0x2c   :  { %v213_v22 = vpack.c.bf16 %v52_v21, %v51_v20  ;;  %v216_v25 = vpack.c.bf16 %v54_v24, %v53_v23  ;;  %v38_v26 = vld [vmem:[#allocation2] sm:$0xff]  ;;  %p277_p5 = por %p276_p4, %p275_p3 }
  0x2e   :  { %p278_p6 = pnand %p277_p5, %p271_p2 }
  0x32   :  { %199 = vmatpush3.bf16.xpose.msra.mxu0 %v198_v7 }
  0x33   :  { %200 = vmatprep.subr.bf16.mxu0 %v302_v0 }
  0x3a   :  { %202 = vmatpush3.bf16.xpose.msra.mxu0 %v201_v10 }
  0x3b   :  { %203 = vmatprep.subr.bf16.mxu0 %v302_v0 }
  0x42   :  { %205 = vmatpush3.bf16.xpose.msra.mxu0 %v204_v13 }
  0x43   :  { %206 = vmatprep.subr.bf16.mxu0 %v302_v0 }
  0x4a   :  { %208 = vmatpush3.bf16.xpose.msra.mxu0 %v207_v16 }
  0x4b   :  { %209 = vmatprep.subr.bf16.mxu0 %v302_v0 }
  0x52   :  { %211 = vmatpush3.bf16.xpose.msra.mxu0 %v210_v19 }
  0x53   :  { %212 = vmatprep.subr.bf16.mxu0 %v302_v0 }
  0x5a   :  { %214 = vmatpush3.bf16.xpose.msra.mxu0 %v213_v22 }
  0x5b   :  { %215 = vmatprep.subr.bf16.mxu0 %v302_v0 }
  0x62   :  { %217 = vmatpush3.bf16.xpose.msra.mxu0 %v216_v25 }
  0x69   :  { %192 = vmatmul.mubr.f32.vlgmr.msra.gmra.mrb[0].mxu0 %v38_v26 }
 0x13c   :  { %v121_v27 = vpop.f32.mrb[0].mxu0 }
 0x13d   :  { %125 = vst [vmem:[#allocation7] sm:$0xff] %v121_v27  ;;  %v193_v28 = vpop.f32.mrb[1].mxu0 }
 0x13e   :  { %281 = shalt.err (!%p278_p6)
}
 0x13f   :  { %s282_s10 = scalar_lea.hbm %s366_s2, 128 }
 0x140   :  { %p283_p7 = scmp.ne.s32.totalorder %s366_s2, %s282_s10  ;;  %p286_p8 = scmp.lt.u32.totalorder %s282_s10, %s366_s2 }
 0x142   :  { %p288_p9 = pnand %p286_p8, %p283_p7 }
 0x144   :  { %291 = shalt.err (!%p288_p9)
}
 0x145   :  { %135 = dma.vmem_to_hbm [thread:$0]  %s133_s6, 128, %s366_s2, [#allocation4]  }
 0x146   :  { %296 = dma.done.wait [#allocation4], 128  }
 0x147   :  { %297 = vsyncadd [#allocation4], 4294967168 }
 0x148   :  { %139 = vsyncpa [#allocation3], 1 }
 0x149   :  { %140 = vsyncpa [#allocation6], 1 }
 0x14a   :  { %141 = vsyncpa [#allocation4], 1 }

</bundles_post_ra>
